<compile_context>
chip_gen: v7x
topology: tpu7x:2x2x1
jax: 0.10.0
libtpu: 0.0.40
codegen_flags: <defaults>
</compile_context>

<pallas_src>
import functools

import jax
import jax.numpy as jnp
from jax.experimental import pallas as pl
from jax.experimental.pallas import tpu as pltpu


_MXU_MIN_C = 32   # VPU outer-product path costs ~2*C^2*T VALU ops; cross to MXU here.


def skip_connection_kernel(x_ref, w_ref, b_ref, o_ref, *, c_in, use_mxu):
    """x_ref: (nb, C, T); w_ref: (C_out, C_in); b_ref: (C_out, 1); o_ref: (nb, 2C, T)."""
    x = x_ref[...]                                       # skip-branch tile (orig dtype)
    xf = x.astype(jnp.float32)
    wf = w_ref[...].astype(jnp.float32)                  # hoisted converts: once / step
    bf = b_ref[...].astype(jnp.float32)                  # (C_out, 1)

    if use_mxu:
        # nb == 1 on this path (see skip_connection): one clean 2-D MXU matmul
        # on lane-dense weights, no in-kernel relayout / transpose.
        acc = jnp.dot(wf, xf[0], preferred_element_type=jnp.float32)[None]   # (1, C_out, T)
    else:
        # Tiny C: C_in unrolled lane-broadcast FMAs on the VPU (the MXU would
        # pad the contraction C -> 128/256 for nothing).
        acc = wf[:, 0:1] * xf[:, 0:1, :]                 # (C_out,1)*(nb,1,T) -> (nb,C_out,T)
        for ci in range(1, c_in):
            acc = acc + wf[:, ci:ci + 1] * xf[:, ci:ci + 1, :]

    y = jnp.maximum(acc + bf, 0.0).astype(o_ref.dtype)   # bias + ReLU

    # Channel concat (PyTorch dim=1): two direct slice stores -- no (2C, T)
    # intermediate, no sublane reassembly pass over the output tile.
    o_ref[:, :c_in, :] = x
    o_ref[:, c_in:, :] = y


def _round_up(x, m):
    return ((x + m - 1) // m) * m


def _cdiv(a, b):
    return (a + b - 1) // b


def _vmem_budget():
    """Generation-aware (limit, per-step working-set budget) in bytes."""
    try:
        cap = pltpu.get_tpu_info().vmem_capacity_bytes
    except Exception:
        cap = 64 * 1024 * 1024                           # assume smallest (v7x) if unknown
    vmem_limit = int(min(cap // 2, 64 * 1024 * 1024))    # 32 MiB on v7x, 64 MiB on v5e/v6e
    budget = (3 * vmem_limit) // 4                       # headroom for weights/compiler scratch
    return vmem_limit, budget


def _pick_tiles(N, C, hw, itemsize, budget, allow_batch_fold):
    """Pick (batch block nb, lane tile t_s).

    t_s is a multiple of 128; the VMEM estimate accounts for sublane padding of
    the C / 2C axes and for double-buffering of the input and output blocks.
    """
    sub = max(32 // itemsize, 8)                         # 8 (f32) / 16 (bf16) / 32 (int8)
    row_bytes = itemsize * (_round_up(C, sub) + _round_up(2 * C, sub))
    # double-buffered in+out bytes for an (nb, *, t) step = 2 * nb * t * row_bytes

    hw_pad = _round_up(hw, 128)
    max_t = max((budget // (2 * row_bytes)) // 128 * 128, 128)
    t_s = int(min(hw_pad, max_t))

    nb = 1
    if allow_batch_fold and _cdiv(hw, t_s) == 1:
        # Small spatial: fold batch into the block so each DMA step is sizeable,
        # but keep >= 2 grid steps when the problem allows it (megacore split /
        # i+1 prefetch overlap).
        step_bytes = 2 * t_s * row_bytes
        max_nb = max(budget // max(step_bytes, 1), 1)
        nb = int(min(N, max_nb))
        if nb > 1:
            nb = min(nb, max(_cdiv(N, 2), 1))
    return nb, t_s


def skip_connection(x_nchw, w, b):
    """cat([x, relu(conv1x1(x))], dim=1), computed natively in NCHW.

    x_nchw: (N, C, H, W); w: (C_in, C_out); b: (1, C_out).
    """
    N, C, H, W = x_nchw.shape
    hw = H * W
    x3 = x_nchw.reshape(N, C, hw)                        # free view of contiguous NCHW

    use_mxu = C >= _MXU_MIN_C
    # Single weight layout for both paths: (C_out, C_in), lane-dense.
    #   MXU : jnp.dot(wT, x_tile) directly, no in-kernel relayout.
    #   VPU : wT[:, ci:ci+1] is a (C_out, 1) column -> cheap lane-broadcast FMA.
    w_t = jnp.asarray(w).T
    b_col = jnp.asarray(b).reshape(C, 1)

    vmem_limit, budget = _vmem_budget()
    nb, t_s = _pick_tiles(N, C, hw, x_nchw.dtype.itemsize, budget,
                          allow_batch_fold=not use_mxu)
    grid = (_cdiv(N, nb), _cdiv(hw, t_s))

    kernel = functools.partial(skip_connection_kernel, c_in=C, use_mxu=use_mxu)
    out3 = pl.pallas_call(
        kernel,
        out_shape=jax.ShapeDtypeStruct((N, 2 * C, hw), x_nchw.dtype),
        grid=grid,
        in_specs=[
            pl.BlockSpec((nb, C, t_s), lambda n, s: (n, 0, s)),
            pl.BlockSpec(w_t.shape, lambda n, s: (0, 0)),
            pl.BlockSpec((C, 1), lambda n, s: (0, 0)),
        ],
        out_specs=pl.BlockSpec((nb, 2 * C, t_s), lambda n, s: (n, 0, s)),
        compiler_params=pltpu.CompilerParams(
            dimension_semantics=("parallel", "parallel"),
            vmem_limit_bytes=vmem_limit,
        ),
    )(x3, w_t, b_col)

    return out3.reshape(N, 2 * C, H, W)


def reference(x_nchw, w, b):
    """Pure-JAX reference of cat([x, relu(conv1x1(x))], dim=1) in NCHW."""
    N, C, H, W = x_nchw.shape
    y = jnp.einsum("nchw,cd->ndhw", x_nchw.astype(jnp.float32), w.astype(jnp.float32))
    y = jnp.maximum(y + b.reshape(1, C, 1, 1), 0.0).astype(x_nchw.dtype)
    return jnp.concatenate([x_nchw, y], axis=1)


if __name__ == "__main__":
    key = jax.random.PRNGKey(0)
    kx, kw, kb = jax.random.split(key, 3)

    N, C, H, W = 2, 4, 16, 16
    x = jax.random.normal(kx, (N, C, H, W), dtype=jnp.float32)

    # Deterministic submodule parameters: Conv2d(C, C, kernel_size=1) weights,
    # stored as (C_in, C_out); bias stored as (1, C_out).
    w = (jax.random.normal(kw, (C, C), dtype=jnp.float32) / jnp.sqrt(C)).astype(jnp.float32)
    b = jax.random.normal(kb, (1, C), dtype=jnp.float32) * 0.1

    out = skip_connection(x, w, b)
    out = jax.block_until_ready(out)

    ref = reference(x, w, b)
    assert out.shape == (N, 2 * C, H, W), out.shape
    assert jnp.allclose(out, ref, atol=1e-5, rtol=1e-5), "mismatch vs reference"

    print("KERNEL_OK")
</pallas_src>

<mosaic_0001>
module attributes {stable_mosaic.version = 11 : i64} {
  func.func @skip_connection_kernel(%arg0: i32, %arg1: i32, %arg2: memref<1x4x256xf32, #tpu.memory_space<vmem>>, %arg3: memref<4x4xf32, #tpu.memory_space<vmem>>, %arg4: memref<4x1xf32, #tpu.memory_space<vmem>>, %arg5: memref<1x8x256xf32, #tpu.memory_space<vmem>>) attributes {dimension_semantics = [#tpu.dimension_semantics<parallel>, #tpu.dimension_semantics<parallel>], iteration_bounds = array<i64: 2, 1>, scalar_prefetch = 0 : i64, scratch_operands = 0 : i64, tpu.core_type = #tpu.core_type<tc>, window_params = [{transform_indices = @transform_0, window_bounds = array<i64: 1, 4, 256>}, {pipeline_mode = #tpu.pipeline_mode<synchronous>, transform_indices = @transform_1, window_bounds = array<i64: 4, 4>}, {pipeline_mode = #tpu.pipeline_mode<synchronous>, transform_indices = @transform_2, window_bounds = array<i64: 4, 1>}, {transform_indices = @transform_3, window_bounds = array<i64: 1, 8, 256>}]} {
    %c0 = arith.constant 0 : index
    %c0_0 = arith.constant 0 : index
    %c0_1 = arith.constant 0 : index
    %0 = vector.load %arg2[%c0, %c0_0, %c0_1] : memref<1x4x256xf32, #tpu.memory_space<vmem>>, vector<1x4x256xf32>
    %c0_2 = arith.constant 0 : index
    %c0_3 = arith.constant 0 : index
    %1 = vector.load %arg3[%c0_2, %c0_3] : memref<4x4xf32, #tpu.memory_space<vmem>>, vector<4x4xf32>
    %c0_4 = arith.constant 0 : index
    %c0_5 = arith.constant 0 : index
    %2 = vector.load %arg4[%c0_4, %c0_5] : memref<4x1xf32, #tpu.memory_space<vmem>>, vector<4x1xf32>
    %3 = vector.extract_strided_slice %1 {offsets = [0, 0], sizes = [4, 1], strides = [1, 1]} : vector<4x4xf32> to vector<4x1xf32>
    %4 = vector.extract_strided_slice %0 {offsets = [0, 0, 0], sizes = [1, 1, 256], strides = [1, 1, 1]} : vector<1x4x256xf32> to vector<1x1x256xf32>
    %5 = vector.shape_cast %3 : vector<4x1xf32> to vector<1x4x1xf32>
    %6 = vector.broadcast %5 : vector<1x4x1xf32> to vector<1x4x256xf32>
    %7 = vector.broadcast %4 : vector<1x1x256xf32> to vector<1x4x256xf32>
    %8 = arith.mulf %6, %7 : vector<1x4x256xf32>
    %9 = vector.extract_strided_slice %1 {offsets = [0, 1], sizes = [4, 1], strides = [1, 1]} : vector<4x4xf32> to vector<4x1xf32>
    %10 = vector.extract_strided_slice %0 {offsets = [0, 1, 0], sizes = [1, 1, 256], strides = [1, 1, 1]} : vector<1x4x256xf32> to vector<1x1x256xf32>
    %11 = vector.shape_cast %9 : vector<4x1xf32> to vector<1x4x1xf32>
    %12 = vector.broadcast %11 : vector<1x4x1xf32> to vector<1x4x256xf32>
    %13 = vector.broadcast %10 : vector<1x1x256xf32> to vector<1x4x256xf32>
    %14 = arith.mulf %12, %13 : vector<1x4x256xf32>
    %15 = arith.addf %8, %14 : vector<1x4x256xf32>
    %16 = vector.extract_strided_slice %1 {offsets = [0, 2], sizes = [4, 1], strides = [1, 1]} : vector<4x4xf32> to vector<4x1xf32>
    %17 = vector.extract_strided_slice %0 {offsets = [0, 2, 0], sizes = [1, 1, 256], strides = [1, 1, 1]} : vector<1x4x256xf32> to vector<1x1x256xf32>
    %18 = vector.shape_cast %16 : vector<4x1xf32> to vector<1x4x1xf32>
    %19 = vector.broadcast %18 : vector<1x4x1xf32> to vector<1x4x256xf32>
    %20 = vector.broadcast %17 : vector<1x1x256xf32> to vector<1x4x256xf32>
    %21 = arith.mulf %19, %20 : vector<1x4x256xf32>
    %22 = arith.addf %15, %21 : vector<1x4x256xf32>
    %23 = vector.extract_strided_slice %1 {offsets = [0, 3], sizes = [4, 1], strides = [1, 1]} : vector<4x4xf32> to vector<4x1xf32>
    %24 = vector.extract_strided_slice %0 {offsets = [0, 3, 0], sizes = [1, 1, 256], strides = [1, 1, 1]} : vector<1x4x256xf32> to vector<1x1x256xf32>
    %25 = vector.shape_cast %23 : vector<4x1xf32> to vector<1x4x1xf32>
    %26 = vector.broadcast %25 : vector<1x4x1xf32> to vector<1x4x256xf32>
    %27 = vector.broadcast %24 : vector<1x1x256xf32> to vector<1x4x256xf32>
    %28 = arith.mulf %26, %27 : vector<1x4x256xf32>
    %29 = arith.addf %22, %28 : vector<1x4x256xf32>
    %30 = vector.shape_cast %2 : vector<4x1xf32> to vector<1x4x1xf32>
    %31 = vector.broadcast %30 : vector<1x4x1xf32> to vector<1x4x256xf32>
    %32 = arith.addf %29, %31 : vector<1x4x256xf32>
    %cst = arith.constant 0.000000e+00 : f32
    %33 = vector.broadcast %cst : f32 to vector<1x4x256xf32>
    %34 = arith.maximumf %32, %33 : vector<1x4x256xf32>
    %c0_6 = arith.constant 0 : index
    %c0_7 = arith.constant 0 : index
    %c0_8 = arith.constant 0 : index
    %35 = vector.load %arg5[%c0_6, %c0_7, %c0_8] : memref<1x8x256xf32, #tpu.memory_space<vmem>>, vector<1x4x256xf32>
    tpu.vector_store %arg5[%c0_6, %c0_7, %c0_8], %0 {strides = array<i32>} : memref<1x8x256xf32, #tpu.memory_space<vmem>>, vector<1x4x256xf32>,
    %c0_9 = arith.constant 0 : index
    %c4 = arith.constant 4 : index
    %c0_10 = arith.constant 0 : index
    %36 = vector.load %arg5[%c0_9, %c4, %c0_10] : memref<1x8x256xf32, #tpu.memory_space<vmem>>, vector<1x4x256xf32>
    tpu.vector_store %arg5[%c0_9, %c4, %c0_10], %34 {strides = array<i32>} : memref<1x8x256xf32, #tpu.memory_space<vmem>>, vector<1x4x256xf32>,
    return
  }
  func.func @transform_0(%arg0: i32, %arg1: i32) -> (i32, i32, i32) {
    %c0_i32 = arith.constant 0 : i32
    %c0_i32_0 = arith.constant 0 : i32
    return %arg0, %c0_i32, %arg1 : i32, i32, i32
  }
  func.func @transform_1(%arg0: i32, %arg1: i32) -> (i32, i32) {
    %c0_i32 = arith.constant 0 : i32
    %c0_i32_0 = arith.constant 0 : i32
    %c0_i32_1 = arith.constant 0 : i32
    return %c0_i32, %c0_i32_0 : i32, i32
  }
  func.func @transform_2(%arg0: i32, %arg1: i32) -> (i32, i32) {
    %c0_i32 = arith.constant 0 : i32
    %c0_i32_0 = arith.constant 0 : i32
    %c0_i32_1 = arith.constant 0 : i32
    return %c0_i32, %c0_i32_0 : i32, i32
  }
  func.func @transform_3(%arg0: i32, %arg1: i32) -> (i32, i32, i32) {
    %c0_i32 = arith.constant 0 : i32
    %c0_i32_0 = arith.constant 0 : i32
    return %arg0, %c0_i32, %arg1 : i32, i32, i32
  }
}

</mosaic_0001>

<bundles_post_ra>
// kernel: tpu_custom_call.1
= control target key start
LH: loop header
LB: loop body
LE: loop exit
PB: predicated region body
PF: predicated region fallthrough
CT: control target
= control target key end

     0   :  { %8 = vsyncpa [#allocation3], 0  ;;  %s852_s0 = inlined_call_operand.hbm [shape: f32[2,4,256], index: 0, kind: input, shape index: {}]   ;;  %s853_s1 = inlined_call_operand.vmem [shape: f32[4,4], index: 1, kind: input, shape index: {}]   ;;  %s854_s2 = inlined_call_operand.vmem [shape: f32[4,1], index: 2, kind: input, shape index: {}]   ;;  %s855_s3 = inlined_call_operand.hbm [shape: f32[2,8,256], index: 3, kind: output, shape index: {}]  }
   0x1   :  { %10 = vsyncpa [#allocation3 + $0x1], 0 }
   0x2   :  { %11 = vsyncpa [#allocation4], 0 }
   0x3   :  { %13 = vsyncpa [#allocation4 + $0x1], 0  ;;  %s666_s12 = smov 0   ;;  %s668_s13 = smov 0  }
   0x4   :  { %s670_s14 = smov 0   ;;  %s672_s15 = smov 0  }
   0x5   :  { %s674_s16 = smov 0   ;;  %s676_s17 = smov 0  }
   0x6 LB: > { %s436_s18 = sadd.s32 4294967295, %s638_s17   ;;  %s437_s19 = sadd.s32 4294967294, %s638_s17   ;;  %s638_s17 = sphi %s676_s17, %s19_s17   ;;  %s634_s16 = sphi %s674_s16, %s871_s16   ;;  %s630_s15 = sphi %s672_s15, %s870_s15   ;;  %s626_s14 = sphi %s670_s14, %s869_s14   ;;  %s622_s13 = sphi %s668_s13, %s868_s13   ;;  %s618_s12 = sphi %s666_s12, %s867_s12  }
   0x7   : > { %s31_s20 = sadd.s32 1, %s634_s16  ;;  %s40_s21 = sadd.s32 1, %s626_s14 }
   0x8   : > { %p33_p0 = scmp.ge.s32.totalorder %s31_s20, 2  ;;  %p47_p1 = scmp.ne.s32.totalorder %s626_s14, %s622_s13 }
   0x9   : > { %p48_p2 = scmp.eq.s32.totalorder %s638_s17, 0  ;;  %p53_p3 = scmp.ne.s32.totalorder %s622_s13, %s618_s12 }
   0xa   : > { %s873_s20 = smov (%p33_p0, %s31_s20), 0  ;;  %p54_p5 = scmp.eq.s32.totalorder %s436_s18, 0 }
   0xb   : > { %p707_p4 = por %p48_p2, %p47_p1  ;;  %s35_s23 = ssub.s32 %s634_s16, %s873_s20 }
   0xc   : > { %p121_p6 = scmp.eq.s32.totalorder %s436_s18, 1  ;;  %p38_p7 = scmp.eq.s32.totalorder %s35_s23, 0 }
   0xd   : > { %p713_p8 = por %p54_p5, %p53_p3  ;;  %p127_p10 = scmp.eq.s32.totalorder %s437_s19, 1 }
   0xe   : > { %p717_p9 = por %p121_p6, %p47_p1  ;;  %p465_p13 = scmp.lt.s32.totalorder %s638_s17, 2 }
   0xf   : > { %s722_s26 = scalar_select %p38_p7, %s626_s14, %s40_s21  }
  0x10   : > { %s859_s25 = scalar_select %p717_p9, 1, 0 }
  0x11   : > { %p724_p11 = por %p127_p10, %p53_p3  ;;  %s153_s28 = sand.u32 1, %s626_s14  }
  0x12   : > { %s440_s29 = sshll.u32 %s153_s28, 3  ;;  %s451_s30 = sshll.u32 %s634_s16, 7 }
  0x13   : > { %s860_s27 = scalar_select %p724_p11, 1, 0 }
  0x14   : > { %s735_s6 = scalar_lea.hbm %s852_s0, %s451_s30  ;;  %s157_s7 = scalar_lea.vmem [#allocation2], %s440_s29 }
  0x15   : > { %s167_s8 = sshll.u32 %s157_s7, 4  ;;  %p741_p0 = pnand %p465_p13, %p707_p4  ;;  %s737_s8 = int_to_ptr.vmem [resolvable:$true] %s167_s8 }
  0x16   : > { %s154_s10 = scalar_lea.sflag [#allocation3], %s153_s28  ;;  %s526_s11 = scalar_lea.hbm %s735_s6, 128 }
  0x17   : > { %p527_p3 = scmp.ne.s32.totalorder %s735_s6, %s526_s11  ;;  %p528_p5 = pneg %p741_p0 }
  0x18   : > { %s531_s21 = scalar_lea.hbm %s852_s0, 256  ;;  %p532_p4 = scmp.lt.u32.totalorder %s735_s6, %s852_s0 }
  0x19   : > { %p529_p6 = pnand %p528_p5, %p527_p3  ;;  %p533_p10 = scmp.lt.u32.totalorder %s531_s21, %s526_s11 }
  0x1a   : > { %p535_p12 = scmp.lt.u32.totalorder %s526_s11, %s735_s6 }
  0x1b   : > { %p530_p7 = pneg %p529_p6  ;;  %p534_p13 = por %p533_p10, %p532_p4 }
  0x1d   : > { %p536_p1 = por %p535_p12, %p534_p13 }
  0x1f   : > { %p537_p2 = pnand %p536_p1, %p530_p7 }
  0x21   : > { %540 = shalt.err (!%p537_p2)
}
  0x22   : > { %s541_s28 = scalar_lea.vmem %s737_s8, 128  ;;  %s640_s29 = smov [#allocation2]  }
  0x23   : > { %p542_p3 = scmp.ne.s32.totalorder %s737_s8, %s541_s28  ;;  %s546_s30 = sshll.u32 %s640_s29, 4  ;;  %s547_s30 = int_to_ptr.vmem [resolvable:$false] %s546_s30 }
  0x24   : > { %s548_s4 = scalar_lea.vmem %s547_s30, 256  ;;  %p549_p9 = scmp.lt.s32.totalorder %s737_s8, %s547_s30 }
  0x25   : > { %p544_p6 = pnand %p542_p3, %p528_p5  ;;  %p550_p4 = scmp.lt.s32.totalorder %s548_s4, %s541_s28 }
  0x27   : > { %p545_p11 = pneg %p544_p6  ;;  %p551_p10 = por %p550_p4, %p549_p9 }
  0x29   : > { %p552_p12 = pnand %p551_p10, %p545_p11 }
  0x2b   : > { %555 = shalt.err (!%p552_p12)
}
  0x2c   : > { %460 = dma.hbm_to_vmem [thread:$0]  (!%p741_p0), %s735_s6, 128, %s737_s8, %s154_s10  }
  0x2d   : > { %p862_p1 = scmp.lt.s32.totalorder %s638_s17, 3  ;;  %p863_p2 = scmp.ge.s32.totalorder %s638_s17, 1 }
  0x2f   : > { %p173_p5 = pnand %p863_p2, %p862_p1 }
  0x30   : > { %s777_s5 = sand.u32 (!%p173_p5), 1, %s622_s13  }
  0x31   : > { %176 = sbr.rel (%p173_p5) target bundleno = 220 (0xdc), region = 32  ;;  %s444_s7 = sshll.u32 (!%p173_p5), %s777_s5, 3 }
  0x32   : > { %s179_s11 = scalar_lea.sflag (!%p173_p5), [#allocation3], %s777_s5  ;;  %s182_s18 = scalar_lea.vmem (!%p173_p5), [#allocation2], %s444_s7 }
  0x38   : > { %609 = dma.done.wait (%p713_p8), %s179_s11, 128  }
  0x39   : > { %611 = vsyncadd (%p713_p8), %s179_s11, 4294967168  ;;  %v641_v0 = vmov 0   ;;  %v642_v1 = vmov 2   ;;  %v208_v2 = vld [vmem:[%s853_s1] sm:$0xf]  ;;  %v643_v3 = vmov 1   ;;  %v216_v8 = vlaneseq }
  0x3a   : > { %519 = vset.pattern.permute.xlu0 %v641_v0  ;;  %521 = vset.pattern.permute.xlu1 %v642_v1  ;;  %v644_v4 = vmov 3   ;;  %v209_v5 = vld [vmem:[%s854_s2] sm:$0xf]  ;;  %s445_s10 = sshll.u32 %s777_s5, 4  ;;  %s452_s21 = sshll.u32 %s630_s15, 8 }
  0x3b   : > { %212 = vperm.xlu0 %519, %v208_v2   ;;  %263 = vperm.xlu1 %521, %v208_v2   ;;  %v207_v6 = vld [vmem:[%s182_s18] sm:$0xff]  ;;  %s792_s19 = scalar_lea.vmem [#allocation5], %s445_s10  ;;  %v217_v9 = vshrl.u32 %v216_v8, 7  ;;  %s801_s29 = scalar_lea.hbm %s855_s3, %s452_s21 }
  0x3c   : > { %325 = vst [vmem:[%s792_s19] sm:$0xf] %v207_v6  ;;  %v323_v7 = vcombine.high %v207_v6, %v207_v6  ;;  %s352_s22 = sshll.u32 %s792_s19, 4  ;;  %s336_s30 = scalar_lea.sflag [#allocation4], %s777_s5  ;;  %s803_s22 = int_to_ptr.vmem [resolvable:$true] %s352_s22 }
  0x3d   : > { %v218_v10 = vsub.s32 0, %v217_v9  ;;  %v222_v11 = vsub.s32 4, %v217_v9  ;;  %v242_v12 = vsub.s32 1, %v217_v9  ;;  %v246_v13 = vsub.s32 5, %v217_v9  ;;  %s556_s4 = scalar_lea.vmem %s803_s22, 256  ;;  %p864_p9 = scmp.ne.s32.totalorder %s859_s25, 0 }
  0x3e   : > { %326 = vst [vmem:[%s792_s19 + $0x8] sm:$0xf] %v323_v7  ;;  %v268_v14 = vsub.s32 2, %v217_v9  ;;  %v272_v15 = vsub.s32 6, %v217_v9  ;;  %v294_v16 = vsub.s32 3, %v217_v9  ;;  %v298_v17 = vsub.s32 7, %v217_v9  ;;  %p557_p8 = scmp.ne.s32.totalorder %s803_s22, %s556_s4 }
  0x3f   : > { %520 = vset.pattern.permute.xlu0 %v643_v3  ;;  %522 = vset.pattern.permute.xlu1 %v644_v4  ;;  %v219_v18 = vrot.slane %v207_v6, %v218_v10  ;;  %v223_v19 = vrot.slane %v207_v6, %v222_v11  ;;  %v243_v20 = vrot.slane %v207_v6, %v242_v12  ;;  %s645_s15 = smov [#allocation5]  }
  0x40   : > { %237 = vperm.xlu0 %520, %v208_v2   ;;  %289 = vperm.xlu1 %522, %v208_v2   ;;  %v247_v21 = vrot.slane %v207_v6, %v246_v13  ;;  %v269_v22 = vrot.slane %v207_v6, %v268_v14  ;;  %v273_v23 = vrot.slane %v207_v6, %v272_v15  ;;  %p558_p11 = pnand %p557_p8, %p864_p9  ;;  %s560_s7 = sshll.u32 %s645_s15, 4  ;;  %s561_s7 = int_to_ptr.vmem [resolvable:$false] %s560_s7 }
  0x41   : > { %v295_v26 = vrot.slane %v207_v6, %v294_v16  ;;  %v299_v27 = vrot.slane %v207_v6, %v298_v17  ;;  %v229_v28 = vrot.slane %v219_v18, %v218_v10  ;;  %v233_v29 = vrot.slane %v223_v19, %v218_v10  ;;  %s562_s11 = scalar_lea.vmem %s561_s7, 512  ;;  %p563_p7 = scmp.lt.s32.totalorder %s803_s22, %s561_s7 }
  0x42   : > { %v253_v30 = vrot.slane %v243_v20, %v242_v12  ;;  %v257_v31 = vrot.slane %v247_v21, %v242_v12  ;;  %v279_v32 = vrot.slane %v269_v22, %v268_v14  ;;  %v283_v33 = vrot.slane %v273_v23, %v268_v14  ;;  %p559_p0 = pneg %p558_p11  ;;  %p564_p13 = scmp.lt.s32.totalorder %s562_s11, %s556_s4 }
  0x43   : > { %v305_v34 = vrot.slane %v295_v26, %v294_v16  ;;  %v309_v35 = vrot.slane %v299_v27, %v294_v16 }
  0x44   : > { %523 = vset.pattern.permute.xlu1 %v641_v0  ;;  %524 = vset.pattern.permute.xlu0 %v641_v0  ;;  %p565_p3 = por %p564_p13, %p563_p7 }
  0x45   : > { %316 = vperm.xlu1 %523, %v209_v5  }
  0x46   : > { %p566_p6 = pnand %p565_p3, %p559_p0 }
  0xba   : > { %v213_v24 = vpop.permute.xlu0 %212  ;;  %v264_v25 = vpop.permute.xlu1 %263 }
  0xbb   : > { %v234_v38 = vmul.f32 %v229_v28, %v213_v24  ;;  %v235_v39 = vmul.f32 %v233_v29, %v213_v24  ;;  %v284_v42 = vmul.f32 %v279_v32, %v264_v25  ;;  %v285_v43 = vmul.f32 %v283_v33, %v264_v25 }
  0xbf   : > { %v238_v36 = vpop.permute.xlu0 %237  ;;  %v290_v37 = vpop.permute.xlu1 %289 }
  0xc0   : > { %v258_v40 = vmul.f32 %v253_v30, %v238_v36  ;;  %v259_v41 = vmul.f32 %v257_v31, %v238_v36  ;;  %v310_v46 = vmul.f32 %v305_v34, %v290_v37  ;;  %v311_v47 = vmul.f32 %v309_v35, %v290_v37 }
  0xc2   : > { %v260_v44 = vadd.f32 %v258_v40, %v234_v38  ;;  %v261_v45 = vadd.f32 %v259_v41, %v235_v39 }
  0xc4   : > { %v286_v48 = vadd.f32 %v284_v42, %v260_v44  ;;  %v287_v49 = vadd.f32 %v285_v43, %v261_v45  ;;  %v317_v50 = vpop.permute.xlu1 %316 }
  0xc6   : > { %v312_v51 = vadd.f32 %v310_v46, %v286_v48  ;;  %v313_v52 = vadd.f32 %v311_v47, %v287_v49 }
  0xc8   : > { %v319_v53 = vadd.f32 %v317_v50, %v312_v51  ;;  %v320_v54 = vadd.f32 %v317_v50, %v313_v52 }
  0xca   : > { %v321_v55 = vmax.f32 %v319_v53, 0.0  ;;  %v322_v56 = vmax.f32 %v320_v54, 0.0 }
  0xcc   : > { %v329_v57 = vrot.slane %v321_v55, 4  ;;  %v330_v58 = vrot.slane %v322_v56, 4 }
  0xce   : > { %333 = vst [vmem:[%s792_s19] sm:$0xf0] %v329_v57  ;;  %334 = vst [vmem:[%s792_s19 + $0x8] sm:$0xf0] %v330_v58 }
  0xcf   : > { %569 = shalt.err (!%p566_p6)
}
  0xd0   : > { %s570_s5 = scalar_lea.hbm %s801_s29, 256  ;;  %s574_s8 = scalar_lea.hbm %s855_s3, 512 }
  0xd1   : > { %p571_p4 = scmp.ne.s32.totalorder %s801_s29, %s570_s5  ;;  %p575_p1 = scmp.lt.u32.totalorder %s801_s29, %s855_s3 }
  0xd2   : > { %p576_p2 = scmp.lt.u32.totalorder %s574_s8, %s570_s5  ;;  %p578_p8 = scmp.lt.u32.totalorder %s570_s5, %s801_s29 }
  0xd3   : > { %p572_p10 = pnand %p571_p4, %p864_p9 }
  0xd4   : > { %p577_p5 = por %p576_p2, %p575_p1 }
  0xd5   : > { %p573_p12 = pneg %p572_p10 }
  0xd6   : > { %p579_p11 = por %p578_p8, %p577_p5 }
  0xd8   : > { %p580_p0 = pnand %p579_p11, %p573_p12 }
  0xda   : > { %583 = shalt.err (!%p580_p0)
}
  0xdb   : > { %455 = dma.vmem_to_hbm [thread:$0]  (%p864_p9), %s803_s22, 256, %s801_s29, %s336_s30  }
  0xdc PF: > { %s364_s10 = sand.u32 1, %s618_s12   ;;  %p865_p7 = scmp.ne.s32.totalorder %s860_s27, 0 }
  0xdd   : > { %p866_p13 = scmp.ge.s32.totalorder %s638_s17, 2  ;;  %s365_s19 = scalar_lea.sflag [#allocation4], %s364_s10 }
  0xdf   : > { %p462_p3 = pnand %p866_p13, %p865_p7 }
  0xe1   : > { %613 = dma.done.wait (!%p462_p3), %s365_s19, 256  }
  0xe2   : > { %615 = vsyncadd (!%p462_p3), %s365_s19, 4294967040  ;;  %s19_s17 = sadd.s32 1, %s638_s17   ;;  %s867_s12 = smov %s622_s13 }
  0xe3   : > { %p16_p6 = scmp.ge.s32.totalorder %s19_s17, 4   ;;  %s868_s13 = smov %s626_s14 }
  0xe4   : > { %s869_s14 = smov %s722_s26  ;;  %s870_s15 = smov %s634_s16 }
  0xe5   : > { %s871_s16 = smov %s873_s20  ;;  %18 = sbr.rel (!%p16_p6) target bundleno = 6 (0x6), region = 77 }
  0xec   :  { %370 = vsyncpa [#allocation3], 1 }
  0xed   :  { %372 = vsyncpa [#allocation3 + $0x1], 1 }
  0xee   :  { %373 = vsyncpa [#allocation4], 1 }
  0xef   :  { %375 = vsyncpa [#allocation4 + $0x1], 1 }

</bundles_post_ra>
